<compile_context>
chip_gen: v5e
topology: v5e:2x2
jax: 0.10.0
libtpu: 0.0.40
codegen_flags: <defaults>
</compile_context>

<pallas_src>
import jax
import jax.numpy as jnp
from jax.experimental import pallas as pl
from jax.experimental.pallas import tpu as pltpu


def _mlp_kernel(x_ref, w1_ref, b1_ref, w2_ref, b2_ref, w3_ref, o_ref):
    x = x_ref[...]                       # (2, TB)   batch on lanes
    w1 = w1_ref[...]                     # (8, 2)    Linear(2,8).weight  (out, in)
    b1 = b1_ref[...]                     # (8, 1)
    w2 = w2_ref[...]                     # (8, 8)    Linear(8,8).weight  (out, in)
    b2 = b2_ref[...]                     # (8, 1)
    w3 = w3_ref[...]                     # (8, 1)    Linear(8,1).weight.T (in, out)

    # ---- Layer 1: K=2 contraction as 2 VPU broadcast-FMAs (MXU not worth it) ----
    h = jnp.maximum(w1[:, 0:1] * x[0:1, :] + w1[:, 1:2] * x[1:2, :] + b1, 0.0)  # (8, TB)

    # ---- Layer 2: 8x8 contraction on the MXU (h already K-on-sublanes, B-on-lanes) ----
    h2 = jnp.maximum(
        jnp.dot(w2, h, preferred_element_type=jnp.float32) + b2, 0.0)           # (8, TB)

    # ---- Layer 3: N=1 output = elementwise mul + sublane reduction (XLU) ----
    logit = jnp.sum(w3 * h2, axis=0, keepdims=True)                             # (1, TB)

    # Numerically stable sigmoid; exp and approx reciprocal both ride the EUP slot.
    e = jnp.exp(-jnp.abs(logit))
    inv = pl.reciprocal(1.0 + e, approx=True)       # sigmoid(|logit|)
    o_ref[...] = jnp.where(logit >= 0, inv, e * inv)  # e*inv == e/(1+e) == sigmoid(logit<0)


def _choose_tb(B, cap=32768):
    """Pick a lane-dense batch tile (multiple of 128, <= cap) that yields >= 2
    balanced grid blocks when there is enough work (helps v7x's 2 TensorCores)."""
    chunks = max(1, (B + 127) // 128)     # number of 128-lane chunks
    if chunks >= 8:
        target_blocks = 4
    elif chunks >= 2:
        target_blocks = 2
    else:
        target_blocks = 1
    tb = ((chunks + target_blocks - 1) // target_blocks) * 128
    return min(tb, cap)


def a_gr_forward(x, w1, b1, w2, b2, w3, *, tb=None):
    """x: (B, 2) float32 -> (B, 1) float32. Weights in (out, in) layout,
    biases as (8, 1) columns, w3 pre-transposed to (8, 1)."""
    B = x.shape[0]
    if tb is None:
        tb = _choose_tb(B)
    tb = max(128, ((tb + 127) // 128) * 128)
    n_blocks = pl.cdiv(B, tb)
    bp = n_blocks * tb

    # Batch onto the lane axis; pad only the tail tile (no full zeros buffer).
    xt = x.T.astype(jnp.float32)                       # (2, B)
    if bp > B:
        xt = jnp.pad(xt, ((0, 0), (0, bp - B)))        # (2, bp)

    out = pl.pallas_call(
        _mlp_kernel,
        out_shape=jax.ShapeDtypeStruct((1, bp), jnp.float32),
        grid=(n_blocks,),
        in_specs=[
            pl.BlockSpec((2, tb), lambda i: (0, i)),   # x: tiled along batch lanes
            pl.BlockSpec((8, 2), lambda i: (0, 0)),    # weights/biases resident
            pl.BlockSpec((8, 1), lambda i: (0, 0)),
            pl.BlockSpec((8, 8), lambda i: (0, 0)),
            pl.BlockSpec((8, 1), lambda i: (0, 0)),
            pl.BlockSpec((8, 1), lambda i: (0, 0)),
        ],
        out_specs=pl.BlockSpec((1, tb), lambda i: (0, i)),
        compiler_params=pltpu.CompilerParams(
            dimension_semantics=("parallel",),          # shard B tiles over TCs (v7x)
            vmem_limit_bytes=32 * 1024 * 1024,          # headroom for large tiles
        ),
    )(xt, w1, b1, w2, b2, w3)

    return out[:, :B].T                                 # back to (B, 1)


def init_params(key):
    # Deterministic init mimicking torch.nn.Linear's uniform(-1/sqrt(fan_in), +).
    k1, k2, k3, k4, k5 = jax.random.split(key, 5)

    def u(k, shape, fan_in):
        bound = 1.0 / jnp.sqrt(fan_in)
        return jax.random.uniform(k, shape, jnp.float32, -bound, bound)

    w1 = u(k1, (8, 2), 2)    # Linear(2, 8).weight   (out, in)
    b1 = u(k2, (8, 1), 2)    # bias as a column for (8, B) broadcasting
    w2 = u(k3, (8, 8), 8)    # Linear(8, 8).weight   (out, in)
    b2 = u(k4, (8, 1), 8)
    w3 = u(k5, (8, 1), 8)    # Linear(8, 1, bias=False).weight, pre-transposed (in, out)
    return w1, b1, w2, b2, w3


def reference(x, w1, b1, w2, b2, w3):
    h1 = jnp.maximum(x @ w1.T + b1[:, 0], 0.0)
    h2 = jnp.maximum(h1 @ w2.T + b2[:, 0], 0.0)
    return jax.nn.sigmoid(h2 @ w3)


if __name__ == "__main__":
    key = jax.random.PRNGKey(0)
    kx, kp = jax.random.split(key)
    B = 8
    x = jax.random.normal(kx, (B, 2), jnp.float32)   # batch=8, features=2
    params = init_params(kp)

    out = jax.block_until_ready(a_gr_forward(x, *params))
    ref = reference(x, *params)

    assert out.shape == (B, 1)
    # Slightly relaxed tolerance: approx EUP reciprocal in the sigmoid epilogue.
    assert jnp.allclose(out, ref, atol=1e-3, rtol=1e-3), (out, ref)
    print("KERNEL_OK")
</pallas_src>

<mosaic_0001>
module attributes {stable_mosaic.version = 11 : i64} {
  func.func @_mlp_kernel(%arg0: i32, %arg1: memref<2x128xf32, #tpu.memory_space<vmem>>, %arg2: memref<8x2xf32, #tpu.memory_space<vmem>>, %arg3: memref<8x1xf32, #tpu.memory_space<vmem>>, %arg4: memref<8x8xf32, #tpu.memory_space<vmem>>, %arg5: memref<8x1xf32, #tpu.memory_space<vmem>>, %arg6: memref<8x1xf32, #tpu.memory_space<vmem>>, %arg7: memref<1x128xf32, #tpu.memory_space<vmem>>) attributes {dimension_semantics = [#tpu.dimension_semantics<parallel>], iteration_bounds = array<i64: 1>, scalar_prefetch = 0 : i64, scratch_operands = 0 : i64, tpu.core_type = #tpu.core_type<tc>, window_params = [{transform_indices = @transform_0, window_bounds = array<i64: 2, 128>}, {pipeline_mode = #tpu.pipeline_mode<synchronous>, transform_indices = @transform_1, window_bounds = array<i64: 8, 2>}, {pipeline_mode = #tpu.pipeline_mode<synchronous>, transform_indices = @transform_2, window_bounds = array<i64: 8, 1>}, {pipeline_mode = #tpu.pipeline_mode<synchronous>, transform_indices = @transform_3, window_bounds = array<i64: 8, 8>}, {pipeline_mode = #tpu.pipeline_mode<synchronous>, transform_indices = @transform_4, window_bounds = array<i64: 8, 1>}, {pipeline_mode = #tpu.pipeline_mode<synchronous>, transform_indices = @transform_5, window_bounds = array<i64: 8, 1>}, {transform_indices = @transform_6, window_bounds = array<i64: 1, 128>}]} {
    %c0 = arith.constant 0 : index
    %c0_0 = arith.constant 0 : index
    %0 = vector.load %arg1[%c0, %c0_0] : memref<2x128xf32, #tpu.memory_space<vmem>>, vector<2x128xf32>
    %c0_1 = arith.constant 0 : index
    %c0_2 = arith.constant 0 : index
    %1 = vector.load %arg2[%c0_1, %c0_2] : memref<8x2xf32, #tpu.memory_space<vmem>>, vector<8x2xf32>
    %c0_3 = arith.constant 0 : index
    %c0_4 = arith.constant 0 : index
    %2 = vector.load %arg3[%c0_3, %c0_4] : memref<8x1xf32, #tpu.memory_space<vmem>>, vector<8x1xf32>
    %c0_5 = arith.constant 0 : index
    %c0_6 = arith.constant 0 : index
    %3 = vector.load %arg4[%c0_5, %c0_6] : memref<8x8xf32, #tpu.memory_space<vmem>>, vector<8x8xf32>
    %c0_7 = arith.constant 0 : index
    %c0_8 = arith.constant 0 : index
    %4 = vector.load %arg5[%c0_7, %c0_8] : memref<8x1xf32, #tpu.memory_space<vmem>>, vector<8x1xf32>
    %c0_9 = arith.constant 0 : index
    %c0_10 = arith.constant 0 : index
    %5 = vector.load %arg6[%c0_9, %c0_10] : memref<8x1xf32, #tpu.memory_space<vmem>>, vector<8x1xf32>
    %6 = vector.extract_strided_slice %1 {offsets = [0, 0], sizes = [8, 1], strides = [1, 1]} : vector<8x2xf32> to vector<8x1xf32>
    %7 = vector.extract_strided_slice %0 {offsets = [0, 0], sizes = [1, 128], strides = [1, 1]} : vector<2x128xf32> to vector<1x128xf32>
    %8 = vector.broadcast %6 : vector<8x1xf32> to vector<8x128xf32>
    %9 = vector.broadcast %7 : vector<1x128xf32> to vector<8x128xf32>
    %10 = arith.mulf %8, %9 : vector<8x128xf32>
    %11 = vector.extract_strided_slice %1 {offsets = [0, 1], sizes = [8, 1], strides = [1, 1]} : vector<8x2xf32> to vector<8x1xf32>
    %12 = vector.extract_strided_slice %0 {offsets = [1, 0], sizes = [1, 128], strides = [1, 1]} : vector<2x128xf32> to vector<1x128xf32>
    %13 = vector.broadcast %11 : vector<8x1xf32> to vector<8x128xf32>
    %14 = vector.broadcast %12 : vector<1x128xf32> to vector<8x128xf32>
    %15 = arith.mulf %13, %14 : vector<8x128xf32>
    %16 = arith.addf %10, %15 : vector<8x128xf32>
    %17 = vector.broadcast %2 : vector<8x1xf32> to vector<8x128xf32>
    %18 = arith.addf %16, %17 : vector<8x128xf32>
    %cst = arith.constant 0.000000e+00 : f32
    %19 = vector.broadcast %cst : f32 to vector<8x128xf32>
    %20 = arith.maximumf %18, %19 : vector<8x128xf32>
    %cst_11 = arith.constant dense<0.000000e+00> : vector<8x128xf32>
    %21 = tpu.matmul %3, %20, %cst_11 {dimension_numbers = #tpu.dot_dimension_numbers<[1], [0], [0], [1], [0, 0, 1, 1], [], []>} : vector<8x8xf32>, vector<8x128xf32>, vector<8x128xf32> -> vector<8x128xf32>
    %22 = vector.broadcast %4 : vector<8x1xf32> to vector<8x128xf32>
    %23 = arith.addf %21, %22 : vector<8x128xf32>
    %cst_12 = arith.constant 0.000000e+00 : f32
    %24 = vector.broadcast %cst_12 : f32 to vector<8x128xf32>
    %25 = arith.maximumf %23, %24 : vector<8x128xf32>
    %26 = vector.broadcast %5 : vector<8x1xf32> to vector<8x128xf32>
    %27 = arith.mulf %26, %25 : vector<8x128xf32>
    %cst_13 = arith.constant dense<0.000000e+00> : vector<128xf32>
    %28 = vector.multi_reduction <add>, %27, %cst_13 [0] : vector<8x128xf32> to vector<128xf32>
    %29 = vector.shape_cast %28 : vector<128xf32> to vector<1x128xf32>
    %30 = math.absf %29 : vector<1x128xf32>
    %cst_14 = arith.constant 0.000000e+00 : f32
    %31 = vector.broadcast %cst_14 : f32 to vector<1x128xf32>
    %32 = arith.subf %31, %30 : vector<1x128xf32>
    %33 = math.exp %32 : vector<1x128xf32>
    %cst_15 = arith.constant 1.000000e+00 : f32
    %34 = vector.broadcast %cst_15 : f32 to vector<1x128xf32>
    %35 = arith.addf %34, %33 : vector<1x128xf32>
    %36 = tpu.reciprocal %35 {approx = true} : vector<1x128xf32> -> vector<1x128xf32>
    %cst_16 = arith.constant 0.000000e+00 : f32
    %37 = vector.broadcast %cst_16 : f32 to vector<1x128xf32>
    %38 = arith.cmpf oge, %29, %37 : vector<1x128xf32>
    %39 = arith.mulf %33, %36 : vector<1x128xf32>
    %40 = arith.select %38, %36, %39 : vector<1x128xi1>, vector<1x128xf32>
    %c0_17 = arith.constant 0 : index
    %c0_18 = arith.constant 0 : index
    %41 = vector.load %arg7[%c0_17, %c0_18] : memref<1x128xf32, #tpu.memory_space<vmem>>, vector<1x128xf32>
    tpu.vector_store %arg7[%c0_17, %c0_18], %40 {strides = array<i32>} : memref<1x128xf32, #tpu.memory_space<vmem>>, vector<1x128xf32>,
    return
  }
  func.func @transform_0(%arg0: i32) -> (i32, i32) {
    %c0_i32 = arith.constant 0 : i32
    %c0_i32_0 = arith.constant 0 : i32
    return %c0_i32, %arg0 : i32, i32
  }
  func.func @transform_1(%arg0: i32) -> (i32, i32) {
    %c0_i32 = arith.constant 0 : i32
    %c0_i32_0 = arith.constant 0 : i32
    %c0_i32_1 = arith.constant 0 : i32
    return %c0_i32, %c0_i32_0 : i32, i32
  }
  func.func @transform_2(%arg0: i32) -> (i32, i32) {
    %c0_i32 = arith.constant 0 : i32
    %c0_i32_0 = arith.constant 0 : i32
    %c0_i32_1 = arith.constant 0 : i32
    return %c0_i32, %c0_i32_0 : i32, i32
  }
  func.func @transform_3(%arg0: i32) -> (i32, i32) {
    %c0_i32 = arith.constant 0 : i32
    %c0_i32_0 = arith.constant 0 : i32
    %c0_i32_1 = arith.constant 0 : i32
    return %c0_i32, %c0_i32_0 : i32, i32
  }
  func.func @transform_4(%arg0: i32) -> (i32, i32) {
    %c0_i32 = arith.constant 0 : i32
    %c0_i32_0 = arith.constant 0 : i32
    %c0_i32_1 = arith.constant 0 : i32
    return %c0_i32, %c0_i32_0 : i32, i32
  }
  func.func @transform_5(%arg0: i32) -> (i32, i32) {
    %c0_i32 = arith.constant 0 : i32
    %c0_i32_0 = arith.constant 0 : i32
    %c0_i32_1 = arith.constant 0 : i32
    return %c0_i32, %c0_i32_0 : i32, i32
  }
  func.func @transform_6(%arg0: i32) -> (i32, i32) {
    %c0_i32 = arith.constant 0 : i32
    %c0_i32_0 = arith.constant 0 : i32
    return %c0_i32, %arg0 : i32, i32
  }
}

</mosaic_0001>

<bundles_post_ra>
// kernel: tpu_custom_call.1
= control target key start
LH: loop header
LB: loop body
LE: loop exit
PB: predicated region body
PF: predicated region fallthrough
CT: control target
= control target key end

     0   :  { %v158_v2 = vmov 0   ;;  %s217_s0 = inlined_call_operand.vmem [shape: f32[2,128], index: 0, kind: input, shape index: {}]   ;;  %s218_s1 = inlined_call_operand.vmem [shape: f32[8,2], index: 1, kind: input, shape index: {}]   ;;  %s219_s2 = inlined_call_operand.vmem [shape: f32[8,1], index: 2, kind: input, shape index: {}]   ;;  %s220_s3 = inlined_call_operand.vmem [shape: f32[8,8], index: 3, kind: input, shape index: {}]   ;;  %s221_s4 = inlined_call_operand.vmem [shape: f32[8,1], index: 4, kind: input, shape index: {}]   ;;  %s222_s5 = inlined_call_operand.vmem [shape: f32[8,1], index: 5, kind: input, shape index: {}]   ;;  %s223_s6 = inlined_call_operand.hbm [shape: f32[1,128], index: 6, kind: output, shape index: {}]  }
   0x1   :  { %v25_v0 = vld [vmem:[%s218_s1] sm:$0xff]  ;;  %123 = vset.pattern.permute.xlu0 %v158_v2  ;;  %125 = vset.pattern.permute.xlu1 %v158_v2 }
   0x2   :  { %v26_v1 = vld [vmem:[%s219_s2] sm:$0xff] }
   0x3   :  { %11 = vsyncpa [#allocation3], 0  ;;  %32 = vperm.xlu0 %123, %v25_v0   ;;  %46 = vperm.xlu1 %125, %v26_v1   ;;  %v28_v3 = vld [vmem:[%s221_s4] sm:$0xff]  ;;  %v159_v4 = vmov 1   ;;  %vm56_vm0 = vcmask 64512   ;;  %s110_s7 = sshll.u32 %s223_s6, 4  ;;  %s111_s7 = int_to_ptr.hbm [resolvable:$true] %s110_s7 }
   0x4   :  { %126 = vset.pattern.permute.xlu2 %v158_v2  ;;  %v29_v5 = vld [vmem:[%s222_s5] sm:$0xff] }
   0x5   :  { %83 = vperm.xlu2 %126, %v29_v5   ;;  %v24_v7 = vld [vmem:[%s217_s0] sm:$0x3]  ;;  %s160_s0 = smov [#allocation2]  }
   0x6   :  { %v35_v8 = vperm.slane %v24_v7, 0  ;;  %v41_v9 = vperm.slane %v24_v7, 1  ;;  %v27_v17 = vld [vmem:[%s220_s3] sm:$0xff]  ;;  %s108_s3 = sshll.u32 %s160_s0, 4  ;;  %s109_s3 = int_to_ptr.vmem [resolvable:$true] %s108_s3 }
   0xb   :  { %124 = vset.pattern.permute.xlu0 %v159_v4  ;;  %53 = vperm.xlu1 %125, %v28_v3  }
   0xc   :  { %38 = vperm.xlu0 %124, %v25_v0  }
  0x14   :  { %127 = vset.pattern.permute.xlu0 %v158_v2 }
  0x5f   :  { %v84_v21 = vpop.permute.xlu2 %83 }
  0x75   :  { %v33_v6 = vpop.permute.xlu0 %32  ;;  %v47_v14 = vpop.permute.xlu1 %46 }
  0x76   :  { %v36_v11 = vmul.f32 %v35_v8, %v33_v6 }
  0x7d   :  { %v54_v18 = vpop.permute.xlu1 %53 }
  0x7e   :  { %v39_v10 = vpop.permute.xlu0 %38 }
  0x7f   :  { %v42_v12 = vmul.f32 %v41_v9, %v39_v10 }
  0x81   :  { %v43_v13 = vadd.f32 %v42_v12, %v36_v11 }
  0x83   :  { %v49_v15 = vadd.f32 %v47_v14, %v43_v13 }
  0x85   :  { %v50_v16 = vmax.f32 %v49_v15, 0.0 }
  0x87   :  { %75 = vmatpush.msra.mxu0 %v50_v16 }
  0x88   :  { %119 = vmatmul.msk.f32.vlgmr.msra.gmra.mxu0 %vm56_vm0, %v27_v17 }
 0x105   :  { %v77_v19 = vpop.f32.mrf.mxu0 }
 0x106   :  { %v78_v20 = vadd.f32 %v77_v19, %v54_v18 }
 0x108   :  { %v80_v22 = vmax.f32 %v78_v20, 0.0 }
 0x10a   :  { %v86_v23 = vmul.f32 %v84_v21, %v80_v22 }
 0x10c   :  { %v87_v24 = vrot.slane %v86_v23, 4 }
 0x10e   :  { %v88_v25 = vadd.f32 %v87_v24, %v86_v23 }
 0x110   :  { %v89_v26 = vrot.slane %v88_v25, 2 }
 0x112   :  { %v90_v27 = vadd.f32 %v89_v26, %v88_v25 }
 0x114   :  { %v91_v28 = vrot.slane %v90_v27, 1 }
 0x116   :  { %v92_v29 = vadd.f32 %v91_v28, %v90_v27 }
 0x118   :  { %v93_v30 = vand.u32 2147483647, %v92_v29  ;;  %vm99_vm1 = vcmp.ge.f32.partialorder %v92_v29, 0.0 }
 0x11a   :  { %v94_v31 = vsub.f32 0.0, %v93_v30 }
 0x11c   :  { %v95_v32 = vmul.f32 1.442695, %v94_v31 }
 0x11e   :  { %128 = vpow2.f32 %v95_v32 }
 0x124   :  { %v129_v33 = vpop.eup %128 }
 0x125   :  { %v97_v34 = vadd.f32 1.0, %v129_v33 }
 0x127   :  { %130 = vrcp.f32 %v97_v34 }
 0x12d   :  { %v131_v35 = vpop.eup %130 }
 0x12e   :  { %v100_v36 = vmul.f32 %v131_v35, %v129_v33 }
 0x130   :  { %v101_v37 = vsel %vm99_vm1, %v131_v35, %v100_v36 }
 0x131   :  { %102 = vst [vmem:[#allocation2] sm:$0x1] %v101_v37 }
 0x132   :  { %113 = dma.vmem_to_hbm [thread:$0]  %s109_s3, 16, %s111_s7, [#allocation3]  }
 0x133   :  { %156 = dma.done.wait [#allocation3], 16  }
 0x134   :  { %157 = vsyncadd [#allocation3], 4294967280 }
 0x135   :  { %118 = vsyncpa [#allocation3], 1 }

</bundles_post_ra>
